<compile_context>
chip_gen: v7x
topology: tpu7x:2x2x1
jax: 0.10.0
libtpu: 0.0.40
codegen_flags: <defaults>
</compile_context>

<pallas_src>
import math

import jax
import jax.numpy as jnp
from jax.experimental import pallas as pl
from jax.experimental.pallas import tpu as pltpu

_LANE = 128
_SUBLANE = 8
_MAX_TILE_ROWS = 512                    # ~85%+ of HBM roofline per tile-size sweep data
_VMEM_BUDGET = 32 * 1024 * 1024         # conservative scoped-VMEM budget across v5e/v6e/v7x


def _round_up(x, m):
    return (x + m - 1) // m * m


# ----------------------------------------------------------------------------
# Pallas kernel: 3-layer ReLU MLP, batch-tiled, option selected via scalar prefetch
# ----------------------------------------------------------------------------
def _op_critic_kernel(z_ref, state_ref, w1_ref, b1_ref, w2_ref, b2_ref,
                      w3t_ref, b3_ref, out_ref):
    del z_ref  # consumed by the BlockSpec index_maps (option selection), not the body

    x = state_ref[...]                                                   # (TB, D)

    h1 = jnp.maximum(
        jnp.dot(x.astype(jnp.bfloat16), w1_ref[...],
                preferred_element_type=jnp.float32) + b1_ref[...], 0.0)   # (TB, F)
    h2 = jnp.maximum(
        jnp.dot(h1.astype(jnp.bfloat16), w2_ref[...],
                preferred_element_type=jnp.float32) + b2_ref[...], 0.0)   # (TB, F)

    # Layer 3: contract (1, F) with (TB, F) over F (an NT matmul, like q @ k.T).
    # The result is already a lane-dense (1, TB) row: no 128-lane zero padding of W3,
    # no (TB, 128) padded intermediate, and an unmasked lane-dense output store.
    v = jax.lax.dot_general(
        w3t_ref[...], h2.astype(jnp.bfloat16),
        dimension_numbers=(((1,), (1,)), ((), ())),
        preferred_element_type=jnp.float32) + b3_ref[...]                 # (1, TB)

    out_ref[...] = v.astype(out_ref.dtype)


# ----------------------------------------------------------------------------
# Parameter repacking (done once, outside the hot path)
# ----------------------------------------------------------------------------
def prepare_params(params):
    """Repack stacked per-option params into the kernel layout.

    params: W1 (O,D,F), b1 (O,F), W2 (O,F,F), b2 (O,F), W3 (O,F,1), b3 (O,1)
    """
    num_options, input_dim, fc_dim = params["W1"].shape

    # Pad the hidden width once to a lane/MXU-friendly multiple of 128 (use 256 if the
    # model is compute-bound on v6e/v7x). Zero rows/columns are exact no-ops through
    # ReLU and the final contraction, so semantics are unchanged.
    f_pad = _round_up(fc_dim, _LANE)

    def pad_to(x, shape):
        out = jnp.zeros(shape, jnp.float32)
        return out.at[tuple(slice(0, s) for s in x.shape)].set(x.astype(jnp.float32))

    w1 = pad_to(params["W1"], (num_options, input_dim, f_pad))
    b1 = pad_to(params["b1"], (num_options, f_pad))
    w2 = pad_to(params["W2"], (num_options, f_pad, f_pad))
    b2 = pad_to(params["b2"], (num_options, f_pad))
    # W3 stored transposed: (O, 1, F) so layer 3 is an NT contraction over F.
    w3t = pad_to(jnp.swapaxes(params["W3"], 1, 2), (num_options, 1, f_pad))
    b3 = params["b3"].reshape(num_options, 1, 1).astype(jnp.float32)

    return {
        "W1": w1.astype(jnp.bfloat16),            # (O, D, Fp)
        "b1": b1[:, None, :],                     # (O, 1, Fp) f32
        "W2": w2.astype(jnp.bfloat16),            # (O, Fp, Fp)
        "b2": b2[:, None, :],                     # (O, 1, Fp) f32
        "W3T": w3t.astype(jnp.bfloat16),          # (O, 1, Fp)
        "b3": b3,                                 # (O, 1, 1) f32
        "input_dim": input_dim,
    }


# ----------------------------------------------------------------------------
# Tiling: derive the batch tile from the VMEM budget; balanced; >=2 steps for v7x
# ----------------------------------------------------------------------------
def _pick_batch_tile(B, D, F):
    if B <= _SUBLANE:
        return B                                   # one tiny tile (full-dim block)
    # Single-buffered weights + biases.
    weight_bytes = (D * F + F * F + F) * 2 + (2 * F + 1) * 4
    # Per-row VMEM cost: state (double-buffered f32), f32 h1/h2 intermediates,
    # bf16 MXU copies, output row (double-buffered f32).
    per_row = 2 * D * 4 + 2 * F * 4 + (D + 2 * F) * 2 + 2 * 4
    fit = max(_SUBLANE, (_VMEM_BUDGET - weight_bytes) // max(per_row, 1))
    cap = max(_SUBLANE, min(_MAX_TILE_ROWS, fit))
    # At least two grid steps when B permits (so v7x's two TensorCores both get work),
    # and balance tiles so the tail step is not mostly padding.
    n_tiles = max(2, pl.cdiv(B, cap))
    return min(_round_up(pl.cdiv(B, n_tiles), _SUBLANE), _round_up(B, _SUBLANE))


def _const_spec(block_shape, index_map):
    """BlockSpec for grid-constant operands (weights): single-buffered if supported."""
    try:
        return pl.BlockSpec(block_shape, index_map, pipeline_mode=pl.Buffered(1))
    except (TypeError, ValueError):   # pragma: no cover - fall back to default buffering
        return pl.BlockSpec(block_shape, index_map)


# ----------------------------------------------------------------------------
# Wrapper: mirrors OP_Critic.forward(state, z) -> (value, {'z': z})
# ----------------------------------------------------------------------------
def op_critic_forward(state, kparams, z):
    if state.ndim == 3 or state.ndim == 1:
        state = state[None, ...]
    state = state.reshape(state.shape[0], -1)
    if state.dtype != jnp.bfloat16:
        # Keep bf16 state if the producer already delivers it (v5e HBM win); otherwise f32.
        state = state.astype(jnp.float32)

    B, D = state.shape
    F_ = kparams["W1"].shape[-1]
    assert D == kparams["input_dim"], (D, kparams["input_dim"])

    TB = _pick_batch_tile(B, D, F_)
    num_tiles = pl.cdiv(B, TB)

    z_arr = jnp.asarray([z], dtype=jnp.int32)     # scalar-prefetch option index (SMEM)

    grid_spec = pltpu.PrefetchScalarGridSpec(
        num_scalar_prefetch=1,
        grid=(num_tiles,),
        in_specs=[
            pl.BlockSpec((TB, D), lambda i, zr: (i, 0)),                 # state (tiled)
            _const_spec((None, D, F_), lambda i, zr: (zr[0], 0, 0)),     # W1[z]
            _const_spec((None, 1, F_), lambda i, zr: (zr[0], 0, 0)),     # b1[z]
            _const_spec((None, F_, F_), lambda i, zr: (zr[0], 0, 0)),    # W2[z]
            _const_spec((None, 1, F_), lambda i, zr: (zr[0], 0, 0)),     # b2[z]
            _const_spec((None, 1, F_), lambda i, zr: (zr[0], 0, 0)),     # W3^T[z]
            _const_spec((None, 1, 1), lambda i, zr: (zr[0], 0, 0)),      # b3[z]
        ],
        # Lane-dense (1, TB) row per tile: HBM write is exactly the real data.
        out_specs=pl.BlockSpec((None, 1, TB), lambda i, zr: (i, 0, 0)),
    )

    weight_bytes = (D * F_ + F_ * F_ + F_) * 2 + (2 * F_ + 1) * 4
    cost = pl.CostEstimate(
        flops=2 * B * (D * F_ + F_ * F_ + F_),
        transcendentals=0,
        bytes_accessed=B * D * state.dtype.itemsize + weight_bytes + num_tiles * TB * 4,
    )

    out = pl.pallas_call(
        _op_critic_kernel,
        grid_spec=grid_spec,
        out_shape=jax.ShapeDtypeStruct((num_tiles, 1, TB), jnp.float32),
        compiler_params=pltpu.CompilerParams(
            dimension_semantics=("parallel",),
            vmem_limit_bytes=_VMEM_BUDGET),
        cost_estimate=cost,
    )(z_arr, state, kparams["W1"], kparams["b1"], kparams["W2"], kparams["b2"],
      kparams["W3T"], kparams["b3"])

    # Row j of tile i is batch element i*TB + j; drop the padded tail rows.
    value = out.reshape(num_tiles * TB)[:B].reshape(B, 1)
    # TODO(synk): for the tiny-B per-call pattern, batch several (state, z) requests
    # into one pallas_call (leading request grid axis, per-request z prefetch) to
    # amortize weight DMA and launch overhead.
    return value, {"z": z}


# ----------------------------------------------------------------------------
# Synthetic parameter init (PyTorch-Linear-style uniform, 'critic' head)
# ----------------------------------------------------------------------------
def init_params(key, num_options, input_dim, fc_dim):
    ks = jax.random.split(key, 6)
    s_in = 1.0 / math.sqrt(input_dim)
    s_fc = 1.0 / math.sqrt(fc_dim)
    return {
        "W1": jax.random.uniform(ks[0], (num_options, input_dim, fc_dim),
                                 jnp.float32, -s_in, s_in),
        "b1": jax.random.uniform(ks[1], (num_options, fc_dim), jnp.float32, -s_in, s_in),
        "W2": jax.random.uniform(ks[2], (num_options, fc_dim, fc_dim),
                                 jnp.float32, -s_fc, s_fc),
        "b2": jax.random.uniform(ks[3], (num_options, fc_dim), jnp.float32, -s_fc, s_fc),
        "W3": jax.random.uniform(ks[4], (num_options, fc_dim, 1), jnp.float32, -s_fc, s_fc),
        "b3": jax.random.uniform(ks[5], (num_options, 1), jnp.float32, -s_fc, s_fc),
    }


def _reference_forward(state, params, z):
    """Plain-JAX f32 (highest precision) reference of OP_Critic.forward."""
    hp = jax.lax.Precision.HIGHEST
    if state.ndim == 3 or state.ndim == 1:           # same unsqueeze rule as the module
        state = state[None, ...]
    x = state.reshape(state.shape[0], -1).astype(jnp.float32)
    h1 = jnp.maximum(jnp.dot(x, params["W1"][z], precision=hp) + params["b1"][z], 0.0)
    h2 = jnp.maximum(jnp.dot(h1, params["W2"][z], precision=hp) + params["b2"][z], 0.0)
    return jnp.dot(h2, params["W3"][z], precision=hp) + params["b3"][z]


if __name__ == "__main__":
    key = jax.random.PRNGKey(0)
    k_param, k_state = jax.random.split(key)

    # Batched 4-D state (B, 2, 4, 4) -> flattened input_dim = 32 (3-D would be treated
    # as a single unbatched sample by the module's unsqueeze rule).
    B, C, H, W = 2, 2, 4, 4
    input_dim, fc_dim, num_options = C * H * W, 64, 3
    z = 1

    params = init_params(k_param, num_options, input_dim, fc_dim)
    kparams = prepare_params(params)
    state = jax.random.normal(k_state, (B, C, H, W), jnp.float32)

    value, info = op_critic_forward(state, kparams, z)
    jax.block_until_ready(value)

    value_ref = _reference_forward(state, params, z)
    assert value.shape == (B, 1) and info["z"] == z
    # The kernel feeds the MXU bf16 operands (f32 accumulation), so compare against the
    # f32 reference with a correspondingly loose tolerance.
    max_err = float(jnp.max(jnp.abs(value - value_ref)))
    assert jnp.allclose(value, value_ref, atol=2e-2, rtol=2e-2), max_err

    print("KERNEL_OK")
</pallas_src>

<mosaic_0001>
module attributes {stable_mosaic.version = 11 : i64} {
  func.func @_op_critic_kernel(%arg0: i32, %arg1: memref<1xi32, #tpu.memory_space<smem>>, %arg2: memref<2x32xf32, #tpu.memory_space<vmem>>, %arg3: memref<1x32x128xbf16, #tpu.memory_space<vmem>>, %arg4: memref<1x1x128xf32, #tpu.memory_space<vmem>>, %arg5: memref<1x128x128xbf16, #tpu.memory_space<vmem>>, %arg6: memref<1x1x128xf32, #tpu.memory_space<vmem>>, %arg7: memref<1x1x128xbf16, #tpu.memory_space<vmem>>, %arg8: memref<1x1x1xf32, #tpu.memory_space<vmem>>, %arg9: memref<1x1x2xf32, #tpu.memory_space<vmem>>) attributes {dimension_semantics = [#tpu.dimension_semantics<parallel>], iteration_bounds = array<i64: 1>, scalar_prefetch = 1 : i64, scratch_operands = 0 : i64, tpu.core_type = #tpu.core_type<tc>, window_params = [{transform_indices = @transform_0, window_bounds = array<i64: 2, 32>}, {pipeline_mode = #tpu.pipeline_mode<synchronous>, transform_indices = @transform_1, window_bounds = array<i64: 1, 32, 128>}, {pipeline_mode = #tpu.pipeline_mode<synchronous>, transform_indices = @transform_2, window_bounds = array<i64: 1, 1, 128>}, {pipeline_mode = #tpu.pipeline_mode<synchronous>, transform_indices = @transform_3, window_bounds = array<i64: 1, 128, 128>}, {pipeline_mode = #tpu.pipeline_mode<synchronous>, transform_indices = @transform_4, window_bounds = array<i64: 1, 1, 128>}, {pipeline_mode = #tpu.pipeline_mode<synchronous>, transform_indices = @transform_5, window_bounds = array<i64: 1, 1, 128>}, {pipeline_mode = #tpu.pipeline_mode<synchronous>, transform_indices = @transform_6, window_bounds = array<i64: 1, 1, 1>}, {transform_indices = @transform_7, window_bounds = array<i64: 1, 1, 2>}]} {
    %c0 = arith.constant 0 : index
    %c0_0 = arith.constant 0 : index
    %0 = vector.load %arg2[%c0, %c0_0] : memref<2x32xf32, #tpu.memory_space<vmem>>, vector<2x32xf32>
    %1 = arith.truncf %0 : vector<2x32xf32> to vector<2x32xbf16>
    %c0_1 = arith.constant 0 : index
    %c0_2 = arith.constant 0 : index
    %c0_3 = arith.constant 0 : index
    %2 = vector.load %arg3[%c0_1, %c0_2, %c0_3] : memref<1x32x128xbf16, #tpu.memory_space<vmem>>, vector<1x32x128xbf16>
    %3 = vector.shape_cast %2 : vector<1x32x128xbf16> to vector<32x128xbf16>
    %cst = arith.constant dense<0.000000e+00> : vector<2x128xf32>
    %4 = tpu.matmul %1, %3, %cst {dimension_numbers = #tpu.dot_dimension_numbers<[1], [0], [0], [1], [0, 0, 1, 1], [], []>} : vector<2x32xbf16>, vector<32x128xbf16>, vector<2x128xf32> -> vector<2x128xf32>
    %c0_4 = arith.constant 0 : index
    %c0_5 = arith.constant 0 : index
    %c0_6 = arith.constant 0 : index
    %5 = vector.load %arg4[%c0_4, %c0_5, %c0_6] : memref<1x1x128xf32, #tpu.memory_space<vmem>>, vector<1x1x128xf32>
    %6 = vector.shape_cast %5 : vector<1x1x128xf32> to vector<1x128xf32>
    %7 = vector.broadcast %6 : vector<1x128xf32> to vector<2x128xf32>
    %8 = arith.addf %4, %7 : vector<2x128xf32>
    %cst_7 = arith.constant 0.000000e+00 : f32
    %9 = vector.broadcast %cst_7 : f32 to vector<2x128xf32>
    %10 = arith.maximumf %8, %9 : vector<2x128xf32>
    %11 = arith.truncf %10 : vector<2x128xf32> to vector<2x128xbf16>
    %c0_8 = arith.constant 0 : index
    %c0_9 = arith.constant 0 : index
    %c0_10 = arith.constant 0 : index
    %12 = vector.load %arg5[%c0_8, %c0_9, %c0_10] : memref<1x128x128xbf16, #tpu.memory_space<vmem>>, vector<1x128x128xbf16>
    %13 = vector.shape_cast %12 : vector<1x128x128xbf16> to vector<128x128xbf16>
    %cst_11 = arith.constant dense<0.000000e+00> : vector<2x128xf32>
    %14 = tpu.matmul %11, %13, %cst_11 {dimension_numbers = #tpu.dot_dimension_numbers<[1], [0], [0], [1], [0, 0, 1, 1], [], []>} : vector<2x128xbf16>, vector<128x128xbf16>, vector<2x128xf32> -> vector<2x128xf32>
    %c0_12 = arith.constant 0 : index
    %c0_13 = arith.constant 0 : index
    %c0_14 = arith.constant 0 : index
    %15 = vector.load %arg6[%c0_12, %c0_13, %c0_14] : memref<1x1x128xf32, #tpu.memory_space<vmem>>, vector<1x1x128xf32>
    %16 = vector.shape_cast %15 : vector<1x1x128xf32> to vector<1x128xf32>
    %17 = vector.broadcast %16 : vector<1x128xf32> to vector<2x128xf32>
    %18 = arith.addf %14, %17 : vector<2x128xf32>
    %cst_15 = arith.constant 0.000000e+00 : f32
    %19 = vector.broadcast %cst_15 : f32 to vector<2x128xf32>
    %20 = arith.maximumf %18, %19 : vector<2x128xf32>
    %c0_16 = arith.constant 0 : index
    %c0_17 = arith.constant 0 : index
    %c0_18 = arith.constant 0 : index
    %21 = vector.load %arg7[%c0_16, %c0_17, %c0_18] : memref<1x1x128xbf16, #tpu.memory_space<vmem>>, vector<1x1x128xbf16>
    %22 = vector.shape_cast %21 : vector<1x1x128xbf16> to vector<1x128xbf16>
    %23 = arith.truncf %20 : vector<2x128xf32> to vector<2x128xbf16>
    %cst_19 = arith.constant dense<0.000000e+00> : vector<1x2xf32>
    %24 = tpu.matmul %22, %23, %cst_19 {dimension_numbers = #tpu.dot_dimension_numbers<[1], [1], [0], [0], [0, 0, 1, 0], [], []>} : vector<1x128xbf16>, vector<2x128xbf16>, vector<1x2xf32> -> vector<1x2xf32>
    %c0_20 = arith.constant 0 : index
    %c0_21 = arith.constant 0 : index
    %c0_22 = arith.constant 0 : index
    %25 = vector.load %arg8[%c0_20, %c0_21, %c0_22] : memref<1x1x1xf32, #tpu.memory_space<vmem>>, vector<1x1x1xf32>
    %26 = vector.shape_cast %25 : vector<1x1x1xf32> to vector<1x1xf32>
    %27 = vector.broadcast %26 : vector<1x1xf32> to vector<1x2xf32>
    %28 = arith.addf %24, %27 : vector<1x2xf32>
    %c0_23 = arith.constant 0 : index
    %c0_24 = arith.constant 0 : index
    %c0_25 = arith.constant 0 : index
    %29 = vector.load %arg9[%c0_23, %c0_24, %c0_25] : memref<1x1x2xf32, #tpu.memory_space<vmem>>, vector<1x1x2xf32>
    %30 = vector.shape_cast %29 : vector<1x1x2xf32> to vector<1x2xf32>
    %31 = vector.shape_cast %28 : vector<1x2xf32> to vector<1x1x2xf32>
    tpu.vector_store %arg9[%c0_23, %c0_24, %c0_25], %31 {strides = array<i32>} : memref<1x1x2xf32, #tpu.memory_space<vmem>>, vector<1x1x2xf32>,
    return
  }
  func.func @transform_0(%arg0: i32, %arg1: memref<1xi32, #tpu.memory_space<smem>>) -> (i32, i32) {
    %c0_i32 = arith.constant 0 : i32
    %c0_i32_0 = arith.constant 0 : i32
    return %arg0, %c0_i32 : i32, i32
  }
  func.func @transform_1(%arg0: i32, %arg1: memref<1xi32, #tpu.memory_space<smem>>) -> (i32, i32, i32) {
    %c0 = arith.constant 0 : index
    %0 = memref.load %arg1[%c0] : memref<1xi32, #tpu.memory_space<smem>>
    %c0_i32 = arith.constant 0 : i32
    %c0_i32_0 = arith.constant 0 : i32
    %c0_i32_1 = arith.constant 0 : i32
    return %0, %c0_i32, %c0_i32_0 : i32, i32, i32
  }
  func.func @transform_2(%arg0: i32, %arg1: memref<1xi32, #tpu.memory_space<smem>>) -> (i32, i32, i32) {
    %c0 = arith.constant 0 : index
    %0 = memref.load %arg1[%c0] : memref<1xi32, #tpu.memory_space<smem>>
    %c0_i32 = arith.constant 0 : i32
    %c0_i32_0 = arith.constant 0 : i32
    %c0_i32_1 = arith.constant 0 : i32
    return %0, %c0_i32, %c0_i32_0 : i32, i32, i32
  }
  func.func @transform_3(%arg0: i32, %arg1: memref<1xi32, #tpu.memory_space<smem>>) -> (i32, i32, i32) {
    %c0 = arith.constant 0 : index
    %0 = memref.load %arg1[%c0] : memref<1xi32, #tpu.memory_space<smem>>
    %c0_i32 = arith.constant 0 : i32
    %c0_i32_0 = arith.constant 0 : i32
    %c0_i32_1 = arith.constant 0 : i32
    return %0, %c0_i32, %c0_i32_0 : i32, i32, i32
  }
  func.func @transform_4(%arg0: i32, %arg1: memref<1xi32, #tpu.memory_space<smem>>) -> (i32, i32, i32) {
    %c0 = arith.constant 0 : index
    %0 = memref.load %arg1[%c0] : memref<1xi32, #tpu.memory_space<smem>>
    %c0_i32 = arith.constant 0 : i32
    %c0_i32_0 = arith.constant 0 : i32
    %c0_i32_1 = arith.constant 0 : i32
    return %0, %c0_i32, %c0_i32_0 : i32, i32, i32
  }
  func.func @transform_5(%arg0: i32, %arg1: memref<1xi32, #tpu.memory_space<smem>>) -> (i32, i32, i32) {
    %c0 = arith.constant 0 : index
    %0 = memref.load %arg1[%c0] : memref<1xi32, #tpu.memory_space<smem>>
    %c0_i32 = arith.constant 0 : i32
    %c0_i32_0 = arith.constant 0 : i32
    %c0_i32_1 = arith.constant 0 : i32
    return %0, %c0_i32, %c0_i32_0 : i32, i32, i32
  }
  func.func @transform_6(%arg0: i32, %arg1: memref<1xi32, #tpu.memory_space<smem>>) -> (i32, i32, i32) {
    %c0 = arith.constant 0 : index
    %0 = memref.load %arg1[%c0] : memref<1xi32, #tpu.memory_space<smem>>
    %c0_i32 = arith.constant 0 : i32
    %c0_i32_0 = arith.constant 0 : i32
    %c0_i32_1 = arith.constant 0 : i32
    return %0, %c0_i32, %c0_i32_0 : i32, i32, i32
  }
  func.func @transform_7(%arg0: i32, %arg1: memref<1xi32, #tpu.memory_space<smem>>) -> (i32, i32, i32) {
    %c0_i32 = arith.constant 0 : i32
    %c0_i32_0 = arith.constant 0 : i32
    %c0_i32_1 = arith.constant 0 : i32
    return %arg0, %c0_i32, %c0_i32_0 : i32, i32, i32
  }
}

</mosaic_0001>

<bundles_post_ra>
// kernel: tpu_custom_call.1
= control target key start
LH: loop header
LB: loop body
LE: loop exit
PB: predicated region body
PF: predicated region fallthrough
CT: control target
= control target key end

     0   :  { %14 = vsyncpa [#allocation5], 0  ;;  %s668_s0 = inlined_call_operand.<no memory space> [shape: s32[1], index: 0, kind: input, shape index: {}]   ;;  %s669_s1 = inlined_call_operand.vmem [shape: f32[2,32], index: 1, kind: input, shape index: {}]   ;;  %s670_s2 = inlined_call_operand.hbm [shape: bf16[3,32,128], index: 2, kind: input, shape index: {}]   ;;  %s671_s3 = inlined_call_operand.vmem [shape: f32[3,1,128], index: 3, kind: input, shape index: {}]   ;;  %s672_s4 = inlined_call_operand.hbm [shape: bf16[3,128,128], index: 4, kind: input, shape index: {}]   ;;  %s673_s5 = inlined_call_operand.vmem [shape: f32[3,1,128], index: 5, kind: input, shape index: {}]   ;;  %s674_s6 = inlined_call_operand.vmem [shape: bf16[3,1,128], index: 6, kind: input, shape index: {}]   ;;  %s675_s7 = inlined_call_operand.vmem [shape: f32[3,1,1], index: 7, kind: input, shape index: {}]   ;;  %s676_s8 = inlined_call_operand.hbm [shape: f32[1,1,2], index: 8, kind: output, shape index: {}]  }
   0x1   :  { %15 = vsyncpa [#allocation8], 0 }
   0x2   :  { %16 = vsyncpa [#allocation6], 0  ;;  %s410_s29 = sshll.u32 %s668_s0, 8  ;;  %s555_s11 = smov [#allocation4]  }
   0x3   :  { %s27_s10 = scalar_lea.hbm %s670_s2, %s410_s29  ;;  %s28_s12 = sshll.u32 %s555_s11, 4  ;;  %s29_s12 = int_to_ptr.vmem [resolvable:$true] %s28_s12 }
   0x4   :  { %s411_s15 = sshll.u32 %s668_s0, 10  ;;  %s479_s16 = scalar_lea.hbm %s27_s10, 256 }
   0x5   :  { %p480_p0 = scmp.ne.s32.totalorder %s27_s10, %s479_s16  ;;  %s481_s19 = scalar_lea.hbm %s670_s2, 768 }
   0x6   :  { %p482_p1 = scmp.lt.u32.totalorder %s27_s10, %s670_s2  ;;  %p483_p2 = scmp.lt.u32.totalorder %s481_s19, %s479_s16 }
   0x7   :  { %p485_p4 = scmp.lt.u32.totalorder %s479_s16, %s27_s10 }
   0x8   :  { %p484_p3 = por %p483_p2, %p482_p1 }
   0xa   :  { %p486_p5 = por %p485_p4, %p484_p3 }
   0xc   :  { %p487_p6 = pnand %p486_p5, %p480_p0 }
   0xe   :  { %490 = shalt.err (!%p487_p6)
}
   0xf   :  { %s491_s22 = scalar_lea.vmem %s29_s12, 256  ;;  %p496_p8 = scmp.lt.s32.totalorder %s29_s12, %s29_s12 }
  0x10   :  { %p492_p7 = scmp.ne.s32.totalorder %s29_s12, %s491_s22  ;;  %p497_p9 = scmp.lt.s32.totalorder %s491_s22, %s491_s22 }
  0x12   :  { %p498_p10 = por %p497_p9, %p496_p8 }
  0x14   :  { %p499_p11 = pnand %p498_p10, %p492_p7 }
  0x16   :  { %502 = shalt.err (!%p499_p11)
}
  0x17   :  { %s556_s23 = smov 64   ;;  %s557_s24 = smov 4  }
  0x18   :  { %34 = dma.hbm_to_vmem [thread:$0]  %s27_s10, 256, %s29_s12, [#allocation5], %s556_s23, %s556_s23, %s557_s24  }
  0x19   :  { %s50_s2 = scalar_lea.hbm %s672_s4, %s411_s15  ;;  %s558_s27 = smov [#allocation7]  }
  0x1a   :  { %s51_s28 = sshll.u32 %s558_s27, 4  ;;  %s503_s29 = scalar_lea.hbm %s50_s2, 1024  ;;  %s52_s28 = int_to_ptr.vmem [resolvable:$true] %s51_s28 }
  0x1b   :  { %p504_p12 = scmp.ne.s32.totalorder %s50_s2, %s503_s29  ;;  %s505_s11 = scalar_lea.hbm %s672_s4, 3072 }
  0x1c   :  { %p506_p13 = scmp.lt.u32.totalorder %s50_s2, %s672_s4  ;;  %p507_p0 = scmp.lt.u32.totalorder %s505_s11, %s503_s29 }
  0x1d   :  { %p509_p2 = scmp.lt.u32.totalorder %s503_s29, %s50_s2 }
  0x1e   :  { %p508_p1 = por %p507_p0, %p506_p13 }
  0x20   :  { %p510_p3 = por %p509_p2, %p508_p1 }
  0x22   :  { %p511_p4 = pnand %p510_p3, %p504_p12 }
  0x24   :  { %514 = shalt.err (!%p511_p4)
}
  0x25   :  { %s515_s10 = scalar_lea.vmem %s52_s28, 1024  ;;  %p520_p6 = scmp.lt.s32.totalorder %s52_s28, %s52_s28 }
  0x26   :  { %p516_p5 = scmp.ne.s32.totalorder %s52_s28, %s515_s10  ;;  %p521_p7 = scmp.lt.s32.totalorder %s515_s10, %s515_s10 }
  0x28   :  { %p522_p8 = por %p521_p7, %p520_p6 }
  0x2a   :  { %p523_p9 = pnand %p522_p8, %p516_p5 }
  0x2c   :  { %526 = shalt.err (!%p523_p9)
}
  0x2d   :  { %57 = dma.hbm_to_vmem [thread:$0]  %s50_s2, 1024, %s52_s28, [#allocation8], %s556_s23, %s556_s23, %s557_s24  }
  0x2e   :  { %549 = dma.done.wait [#allocation5], 256  }
  0x2f   :  { %550 = vsyncadd [#allocation5], 4294967040 }
  0x30   :  { %551 = dma.done.wait [#allocation8], 1024  }
  0x31   :  { %552 = vsyncadd [#allocation8], 4294966272  ;;  %v559_v0 = vmov 0.0   ;;  %vm560_vm0 = vmmov 0   ;;  %v469_v1 = vld [vmem:[#allocation4] sm:$0xff]   ;;  %v470_v2 = vld [vmem:[#allocation4 + $0x8] sm:$0xff]   ;;  %v315_v32 = vlaneseq }
  0x32   :  { %426 = vmatprep.subr.bf16.mxu0 %v559_v0  ;;  %430 = vmatprep.mubr.msk.bf16.mxu0 %vm560_vm0, %v559_v0  ;;  %v124_v3 = vld [vmem:[%s669_s1] sm:$0x3]  ;;  %v471_v4 = vld [vmem:[#allocation7] sm:$0xff]   ;;  %v472_v6 = vld [vmem:[#allocation7 + $0x8] sm:$0xff]   ;;  %vm149_vm1 = vcmask 261120   ;;  %p103_p10 = scmp.lt.s32.totalorder %s668_s0, 2 }
  0x33   :  { %434 = vmatprep.subr.bf16.mxu1 %v559_v0  ;;  %450 = vmatprep.mubr.msk.bf16.mxu1 %vm560_vm0, %v559_v0  ;;  %v125_v5 = vpack.c.bf16 %v124_v3, %v124_v3  ;;  %v473_v7 = vld [vmem:[#allocation7 + $0x10] sm:$0xff]   ;;  %v474_v8 = vld [vmem:[#allocation7 + $0x18] sm:$0xff]   ;;  %v475_v9 = vld [vmem:[#allocation7 + $0x20] sm:$0xff]   ;;  %v561_v21 = vmov 0   ;;  %v316_v33 = vshrl.u32 %v315_v32, 7  ;;  %vm359_vm2 = vcmask 8192  }
  0x34   :  { %427 = vmatpush3.bf16.msra.mxu0 %v469_v1  ;;  %435 = vmatpush3.bf16.msra.mxu1 %v471_v4  ;;  %v476_v10 = vld [vmem:[#allocation7 + $0x28] sm:$0xff]   ;;  %v477_v11 = vld [vmem:[#allocation7 + $0x30] sm:$0xff]   ;;  %v478_v12 = vld [vmem:[#allocation7 + $0x38] sm:$0xff]   ;;  %s678_s0 = smov (!%p103_p10, %s668_s0), 2 }
  0x35   :  { %428 = vmatprep.subr.bf16.mxu0 %v559_v0  ;;  %436 = vmatprep.subr.bf16.mxu1 %v559_v0  ;;  %s105_s20 = scalar_lea.vmem %s671_s3, %s678_s0  ;;  %s121_s23 = scalar_lea.vmem %s675_s7, %s678_s0  ;;  %v317_v34 = vsub.s32 0, %v316_v33 }
  0x36   :  { %v397_v13 = vld [vmem:[%s105_s20] ss:$0 sm:$0xff]  ;;  %468 = vset.pattern.permute.xlu0 %v561_v21  ;;  %s111_s3 = scalar_lea.vmem %s673_s5, %s678_s0  ;;  %s116_s7 = scalar_lea.vmem %s674_s6, %s678_s0 }
  0x37   :  { %v309_v22 = vld [vmem:[%s121_s23] sm:$0x1]  ;;  %s562_s5 = smov [#allocation9]  }
  0x38   :  { %429 = vmatpush3.bf16.msra.mxu0 %v470_v2  ;;  %437 = vmatpush3.bf16.msra.mxu1 %v472_v6  ;;  %v401_v23 = vld [vmem:[%s111_s3] ss:$0 sm:$0xff]  ;;  %s367_s27 = sshll.u32 %s562_s5, 4  ;;  %s368_s27 = int_to_ptr.vmem [resolvable:$true] %s367_s27 }
  0x39   :  { %454 = vmatprep.subr.bf16.mxu0 %v559_v0  ;;  %438 = vmatprep.subr.bf16.mxu1 %v559_v0  ;;  %v307_v31 = vld [vmem:[%s116_s7] sm:$0x1]  ;;  %s527_s28 = scalar_lea.vmem %s368_s27, 16  ;;  %s531_s0 = scalar_lea.vmem %s368_s27, 32 }
  0x3a   :  { %312 = vperm.xlu0 %468, %v309_v22   ;;  %p528_p11 = scmp.ne.s32.totalorder %s368_s27, %s527_s28  ;;  %p532_p12 = scmp.lt.s32.totalorder %s368_s27, %s368_s27 }
  0x3b   :  { %431 = vmatmul.mubr.msk.bf16.vlgmr.msra.gmra.mrb[0].mxu0 %vm149_vm1, %v125_v5  ;;  %p533_p13 = scmp.lt.s32.totalorder %s531_s0, %s527_s28 }
  0x3c   :  { %456 = vmatprep.mubr.msk.bf16.mxu0 %vm560_vm0, %v559_v0  ;;  %439 = vmatpush3.bf16.msra.mxu1 %v473_v7 }
  0x3d   :  { %440 = vmatprep.subr.bf16.mxu1 %v559_v0  ;;  %p534_p0 = por %p533_p13, %p532_p12 }
  0x3f   :  { %p535_p1 = pnand %p534_p0, %p528_p11 }
  0x40   :  { %441 = vmatpush3.bf16.msra.mxu1 %v474_v8 }
  0x41   :  { %442 = vmatprep.subr.bf16.mxu1 %v559_v0 }
  0x44   :  { %443 = vmatpush3.bf16.msra.mxu1 %v475_v9 }
  0x45   :  { %444 = vmatprep.subr.bf16.mxu1 %v559_v0 }
  0x48   :  { %445 = vmatpush3.bf16.msra.mxu1 %v476_v10 }
  0x49   :  { %446 = vmatprep.subr.bf16.mxu1 %v559_v0 }
  0x4c   :  { %447 = vmatpush3.bf16.msra.mxu1 %v477_v11 }
  0x4d   :  { %448 = vmatprep.subr.bf16.mxu1 %v559_v0 }
  0x50   :  { %449 = vmatpush3.bf16.msra.mxu1 %v478_v12 }
  0xb9   :  { %v313_v35 = vpop.permute.xlu0 %312 }
  0xba   :  { %v318_v36 = vrot.slane %v313_v35, %v317_v34 }
 0x10e   :  { %v187_v14 = vpop.f32.mrb[0].mxu0 }
 0x10f   :  { %v188_v15 = vadd.f32 %v397_v13, %v187_v14  ;;  %v432_v16 = vpop.f32.mrb[1].mxu0 }
 0x110   :  { %v190_v17 = vpop.f32.mrb[2].mxu0 }
 0x111   :  { %v193_v18 = vmax.f32 %v188_v15, 0.0  ;;  %v433_v19 = vpop.f32.mrb[3].mxu0 }
 0x113   :  { %v194_v20 = vpack.c.bf16 %v193_v18, %v193_v18 }
 0x115   :  { %451 = vmatmul.mubr.bf16.vlgmr.msra.gmra.mrb[0].mxu1 %v194_v20 }
 0x1e8   :  { %v300_v24 = vpop.f32.mrb[0].mxu1 }
 0x1e9   :  { %v301_v25 = vadd.f32 %v401_v23, %v300_v24  ;;  %v452_v26 = vpop.f32.mrb[1].mxu1 }
 0x1ea   :  { %v303_v27 = vpop.f32.mrb[2].mxu1 }
 0x1eb   :  { %v306_v28 = vmax.f32 %v301_v25, 0.0  ;;  %v453_v29 = vpop.f32.mrb[3].mxu1 }
 0x1ed   :  { %v308_v30 = vpack.c.bf16 %v306_v28, %v306_v28 }
 0x1ef   :  { %455 = vmatpush3.bf16.xpose.msra.mxu0 %v308_v30 }
 0x1f6   :  { %457 = vmatmul.mubr.bf16.vlgmr.msra.gmra.mrb[4].mxu0 %v307_v31 }
 0x2c9   :  { %v353_v37 = vpop.f32.mrb[4].mxu0 }
 0x2ca   :  { %v354_v38 = vadd.f32 %v353_v37, %v318_v36  ;;  %v458_v39 = vpop.f32.mrb[5].mxu0 }
 0x2cb   :  { %v356_v40 = vpop.f32.mrb[6].mxu0 }
 0x2cc   :  { %v459_v41 = vpop.f32.mrb[7].mxu0  ;;  %360 = vst.msk [vmem:[#allocation9] sm:$0x1] %vm359_vm2, %v354_v38 }
 0x2cd   :  { %538 = shalt.err (!%p535_p1)
}
 0x2ce   :  { %s539_s30 = scalar_lea.hbm %s676_s8, 16 }
 0x2cf   :  { %p540_p2 = scmp.ne.s32.totalorder %s676_s8, %s539_s30  ;;  %p543_p3 = scmp.lt.u32.totalorder %s539_s30, %s676_s8 }
 0x2d1   :  { %p545_p4 = pnand %p543_p3, %p540_p2 }
 0x2d3   :  { %548 = shalt.err (!%p545_p4)
}
 0x2d4   :  { %370 = dma.vmem_to_hbm [thread:$0]  %s368_s27, 16, %s676_s8, [#allocation6]  }
 0x2d5   :  { %553 = dma.done.wait [#allocation6], 16  }
 0x2d6   :  { %554 = vsyncadd [#allocation6], 4294967280 }
 0x2d7   :  { %374 = vsyncpa [#allocation5], 1 }
 0x2d8   :  { %375 = vsyncpa [#allocation8], 1 }
 0x2d9   :  { %376 = vsyncpa [#allocation6], 1 }

</bundles_post_ra>
